<compile_context>
chip_gen: v7x
topology: tpu7x:2x2x1
jax: 0.10.0
libtpu: 0.0.40
codegen_flags: <defaults>
</compile_context>

<pallas_src>
import functools

import jax
import jax.numpy as jnp
import numpy as np
from jax.experimental import pallas as pl
from jax.experimental.pallas import tpu as pltpu


def _round_up(x: int, m: int) -> int:
    return ((x + m - 1) // m) * m


def _upsample_matmul_kernel(x_ref, w_ref, o_ref):
    # X[tm, L] @ W[L, tn] -> O[tm, tn] on the MXU, f32 accumulation,
    # store narrowed to the output (input) dtype.
    o_ref[...] = jnp.dot(
        x_ref[...].astype(jnp.float32),
        w_ref[...],
        preferred_element_type=jnp.float32,
    ).astype(o_ref.dtype)


@functools.lru_cache(maxsize=None)
def _vmem_budget_bytes() -> int:
    """Generation-aware VMEM limit (bytes) for the pallas_call."""
    try:
        cap = int(pltpu.get_tpu_info().vmem_capacity_bytes)
    except Exception:
        cap = 64 * 1024 * 1024  # conservative (v7x) default
    cap = max(cap, 32 * 1024 * 1024)
    # ~78% of physical, capped at 100 MiB: ~48 MiB on v7x, ~100 MiB on v5e/v6e.
    return min(int(cap * 0.78), 100 * 1024 * 1024)


@functools.lru_cache(maxsize=None)
def _bilinear_coeff_matrix_fused(l_in: int, h_out: int, s: int,
                                 h_pad_cols: int) -> np.ndarray:
    """Host-side (numpy) align_corners=True weights, width-s fused.

    Column (j*s + w), w in [0, s), holds the 2-tap interpolation weights for
    output length-position j.  The unsqueezed width axis has size 1, so with
    align_corners=True all s width copies are identical -> the matmul output
    is already in the final (h, w) row-major fused layout.  Columns
    [h_out*s, h_pad_cols) are zero padding for lane alignment.
    """
    w = np.zeros((l_in, h_pad_cols), np.float32)
    if h_out == 1:
        src = np.zeros((1,), np.float64)
    else:
        src = np.arange(h_out, dtype=np.float64) * (l_in - 1) / (h_out - 1)
    lo = np.clip(np.floor(src).astype(np.int64), 0, l_in - 1)
    hi = np.minimum(lo + 1, l_in - 1)
    frac = (src - lo).astype(np.float32)
    for wrep in range(s):
        cols = np.arange(h_out) * s + wrep
        np.add.at(w, (lo, cols), 1.0 - frac)
        np.add.at(w, (hi, cols), frac)
    return w


def _choose_tiles(m8: int, l: int, h128: int, bx: int, bo: int, budget: int):
    """Pick (tm, tn): largest tiles whose double-buffered footprint fits budget.

    Preference:
      1. tn = full 128-padded output width  -> W resident, x read exactly once.
      2. largest 128-multiple tn dividing h128 (no extra column padding).
      3. largest 128-multiple tn that fits at all.
    """
    wb = 4  # coefficient matrix stays f32

    def fits(tm, tn):
        return 2 * (tm * l * bx + l * tn * wb + tm * tn * bo) <= budget

    def best_tm(tn, cap):
        tm = min(m8, cap)
        while tm > 8 and not fits(tm, tn):
            tm -= 8
        return tm if fits(tm, tn) else 0

    tm = best_tm(h128, 512)
    if tm:
        return tm, h128

    divisors = [t for t in range(h128 - 128, 127, -128) if h128 % t == 0]
    others = [t for t in range(h128 - 128, 127, -128) if h128 % t != 0]
    for tn in divisors + others:
        tm = best_tm(tn, 256)
        if tm:
            return tm, tn
    return 8, 128


def _upsampling_impl(x: jnp.ndarray, scale_factor: int) -> jnp.ndarray:
    n, c, l = x.shape
    s = int(scale_factor)
    h_out = s * l            # upsampled length axis
    h_fused = h_out * s      # length axis with the width-s replication fused in
    m = n * c

    bx = jnp.dtype(x.dtype).itemsize
    bo = bx                  # output written in the input dtype

    vmem_limit = _vmem_budget_bytes()
    budget = vmem_limit - 2 * 1024 * 1024  # headroom for internal scratch

    m8 = _round_up(m, 8)
    h128 = _round_up(h_fused, 128)
    tm, tn = _choose_tiles(m8, l, h128, bx, bo, budget)
    m_pad = _round_up(m8, tm)
    h_pad = _round_up(h128, tn)

    # f32 coefficient constant (folded into the executable by jit).
    w_full = jnp.asarray(_bilinear_coeff_matrix_fused(l, h_out, s, h_pad))

    x2d = x.reshape(m, l)
    if m_pad != m:
        x2d = jnp.pad(x2d, ((0, m_pad - m), (0, 0)))

    # (cols outer, rows inner): the W tile's block index only changes on the
    # outer axis, so each W tile is DMA'd once and reused across all row steps.
    grid = (h_pad // tn, m_pad // tm)

    y = pl.pallas_call(
        _upsample_matmul_kernel,
        out_shape=jax.ShapeDtypeStruct((m_pad, h_pad), x.dtype),
        grid_spec=pltpu.PrefetchScalarGridSpec(
            num_scalar_prefetch=0,
            grid=grid,
            in_specs=[
                pl.BlockSpec((tm, l), lambda j, i: (i, 0)),   # x rows tile
                pl.BlockSpec((l, tn), lambda j, i: (0, j)),   # W cols tile
            ],
            out_specs=pl.BlockSpec((tm, tn), lambda j, i: (i, j)),
        ),
        compiler_params=pltpu.CompilerParams(
            dimension_semantics=("parallel", "parallel"),
            vmem_limit_bytes=vmem_limit,
        ),
        cost_estimate=pl.CostEstimate(
            flops=2 * m_pad * l * h_pad,
            transcendentals=0,
            bytes_accessed=m_pad * l * bx + l * h_pad * 4 + m_pad * h_pad * bo,
        ),
    )(x2d, w_full)

    # Strip padding (no-op when shapes already aligned) and restore the torch
    # layout: the fused column index is j*s + w, so a plain reshape gives
    # (N, C, H_out, s) without any broadcast/transpose pass.
    y = y[:m, :h_fused]
    out = y.reshape(n, c, h_out, s)

    # torch .squeeze(): drops ALL size-1 dims (also N or C if they equal 1).
    squeezed = tuple(d for d in out.shape if d != 1)
    if squeezed != out.shape:
        out = out.reshape(squeezed)
    return out


@functools.partial(jax.jit, static_argnums=(1,))
def upsampling_forward(x: jnp.ndarray, scale_factor: int) -> jnp.ndarray:
    """Pallas equivalent of Upsampling(scale_factor).forward(x) for 3-D x (N, C, L)."""
    return _upsampling_impl(x, scale_factor)


def _reference(x, scale_factor):
    # Pure-JAX reference (gather-based), same align_corners=True semantics.
    n, c, l = x.shape
    s = int(scale_factor)
    h_out = s * l
    if h_out == 1:
        src = jnp.zeros((1,), jnp.float32)
    else:
        src = jnp.arange(h_out, dtype=jnp.float32) * (l - 1) / (h_out - 1)
    lo = jnp.clip(jnp.floor(src).astype(jnp.int32), 0, l - 1)
    hi = jnp.minimum(lo + 1, l - 1)
    frac = src - lo.astype(jnp.float32)
    xl = jnp.take(x, lo, axis=2)
    xh = jnp.take(x, hi, axis=2)
    y = xl * (1.0 - frac)[None, None, :] + xh * frac[None, None, :]
    y = jnp.broadcast_to(y[..., None], (n, c, h_out, s))
    sq = tuple(d for d in y.shape if d != 1)
    return y.reshape(sq)


if __name__ == "__main__":
    # nn.UpsamplingBilinear2d has no learnable parameters -> nothing to initialize.
    key = jax.random.PRNGKey(0)
    # Module input is 3-D (N, C, L): unsqueeze(3) -> (N, C, L, 1) -> bilinear x2.
    x = jax.random.normal(key, (2, 4, 16), dtype=jnp.float32)
    scale_factor = 2

    out = upsampling_forward(x, scale_factor)
    out = jax.block_until_ready(out)

    ref = _reference(x, scale_factor)
    assert out.shape == ref.shape, (out.shape, ref.shape)
    assert out.dtype == x.dtype, (out.dtype, x.dtype)
    assert jnp.allclose(out, ref, atol=1e-5, rtol=1e-5)
    print("KERNEL_OK")
</pallas_src>

<mosaic_0001>
module attributes {stable_mosaic.version = 11 : i64} {
  func.func @_upsample_matmul_kernel(%arg0: i32, %arg1: i32, %arg2: memref<8x16xf32, #tpu.memory_space<vmem>>, %arg3: memref<16x128xf32, #tpu.memory_space<vmem>>, %arg4: memref<8x128xf32, #tpu.memory_space<vmem>>) attributes {dimension_semantics = [#tpu.dimension_semantics<parallel>, #tpu.dimension_semantics<parallel>], iteration_bounds = array<i64: 1, 1>, scalar_prefetch = 0 : i64, scratch_operands = 0 : i64, tpu.core_type = #tpu.core_type<tc>, window_params = [{transform_indices = @transform_0, window_bounds = array<i64: 8, 16>}, {transform_indices = @transform_1, window_bounds = array<i64: 16, 128>}, {transform_indices = @transform_2, window_bounds = array<i64: 8, 128>}]} {
    %c0 = arith.constant 0 : index
    %c0_0 = arith.constant 0 : index
    %0 = vector.load %arg2[%c0, %c0_0] : memref<8x16xf32, #tpu.memory_space<vmem>>, vector<8x16xf32>
    %c0_1 = arith.constant 0 : index
    %c0_2 = arith.constant 0 : index
    %1 = vector.load %arg3[%c0_1, %c0_2] : memref<16x128xf32, #tpu.memory_space<vmem>>, vector<16x128xf32>
    %cst = arith.constant dense<0.000000e+00> : vector<8x128xf32>
    %2 = tpu.matmul %0, %1, %cst {dimension_numbers = #tpu.dot_dimension_numbers<[1], [0], [0], [1], [0, 0, 1, 1], [], []>} : vector<8x16xf32>, vector<16x128xf32>, vector<8x128xf32> -> vector<8x128xf32>
    %c0_3 = arith.constant 0 : index
    %c0_4 = arith.constant 0 : index
    %3 = vector.load %arg4[%c0_3, %c0_4] : memref<8x128xf32, #tpu.memory_space<vmem>>, vector<8x128xf32>
    tpu.vector_store %arg4[%c0_3, %c0_4], %2 {strides = array<i32>} : memref<8x128xf32, #tpu.memory_space<vmem>>, vector<8x128xf32>,
    return
  }
  func.func @transform_0(%arg0: i32, %arg1: i32) -> (i32, i32) {
    %c0_i32 = arith.constant 0 : i32
    %c0_i32_0 = arith.constant 0 : i32
    return %arg1, %c0_i32 : i32, i32
  }
  func.func @transform_1(%arg0: i32, %arg1: i32) -> (i32, i32) {
    %c0_i32 = arith.constant 0 : i32
    %c0_i32_0 = arith.constant 0 : i32
    return %c0_i32, %arg0 : i32, i32
  }
  func.func @transform_2(%arg0: i32, %arg1: i32) -> (i32, i32) {
    %c0_i32 = arith.constant 0 : i32
    return %arg1, %arg0 : i32, i32
  }
}

</mosaic_0001>

<bundles_post_ra>
// kernel: upsampling_forward.1
= control target key start
LH: loop header
LB: loop body
LE: loop exit
PB: predicated region body
PF: predicated region fallthrough
CT: control target
= control target key end

     0   :  { %7 = vsyncpa [#allocation3], 0  ;;  %s246_s0 = inlined_call_operand.hbm [shape: f32[8,16], index: 0, kind: input, shape index: {}]   ;;  %s247_s1 = inlined_call_operand.hbm [shape: f32[16,128], index: 1, kind: input, shape index: {}]   ;;  %s248_s2 = inlined_call_operand.vmem [shape: f32[8,128], index: 2, kind: output, shape index: {}]  }
   0x1   :  { %8 = vsyncpa [#allocation5], 0  ;;  %s190_s9 = smov [#allocation2]   ;;  %s191_s11 = smov [#allocation4]  }
   0x2   :  { %s15_s10 = sshll.u32 %s190_s9, 4  ;;  %s24_s12 = sshll.u32 %s191_s11, 4  ;;  %s16_s10 = int_to_ptr.vmem [resolvable:$true] %s15_s10  ;;  %s212_s12 = int_to_ptr.vmem [resolvable:$true] %s24_s12 }
   0x3   :  { %s142_s15 = scalar_lea.hbm %s246_s0, 128 }
   0x4   :  { %p143_p0 = scmp.ne.s32.totalorder %s246_s0, %s142_s15  ;;  %p146_p1 = scmp.lt.u32.totalorder %s142_s15, %s246_s0 }
   0x6   :  { %p148_p2 = pnand %p146_p1, %p143_p0 }
   0x8   :  { %151 = shalt.err (!%p148_p2)
}
   0x9   :  { %s152_s20 = scalar_lea.vmem %s16_s10, 128  ;;  %p157_p4 = scmp.lt.s32.totalorder %s16_s10, %s16_s10 }
   0xa   :  { %p153_p3 = scmp.ne.s32.totalorder %s16_s10, %s152_s20  ;;  %p158_p5 = scmp.lt.s32.totalorder %s152_s20, %s152_s20 }
   0xc   :  { %p159_p6 = por %p158_p5, %p157_p4 }
   0xe   :  { %p160_p7 = pnand %p159_p6, %p153_p3 }
  0x10   :  { %163 = shalt.err (!%p160_p7)
}
  0x11   :  { %18 = dma.hbm_to_vmem [thread:$0]  %s246_s0, 128, %s16_s10, [#allocation3]  }
  0x12   :  { %s164_s25 = scalar_lea.hbm %s247_s1, 256 }
  0x13   :  { %p165_p8 = scmp.ne.s32.totalorder %s247_s1, %s164_s25  ;;  %p168_p9 = scmp.lt.u32.totalorder %s164_s25, %s247_s1 }
  0x15   :  { %p170_p10 = pnand %p168_p9, %p165_p8 }
  0x17   :  { %173 = shalt.err (!%p170_p10)
}
  0x18   :  { %s174_s30 = scalar_lea.vmem %s212_s12, 256  ;;  %p179_p12 = scmp.lt.s32.totalorder %s212_s12, %s212_s12 }
  0x19   :  { %p175_p11 = scmp.ne.s32.totalorder %s212_s12, %s174_s30  ;;  %p180_p13 = scmp.lt.s32.totalorder %s174_s30, %s174_s30 }
  0x1b   :  { %p181_p0 = por %p180_p13, %p179_p12 }
  0x1d   :  { %p182_p1 = pnand %p181_p0, %p175_p11 }
  0x1f   :  { %185 = shalt.err (!%p182_p1)
}
  0x20   :  { %s192_s0 = smov 128   ;;  %s193_s3 = smov 8  }
  0x21   :  { %30 = dma.hbm_to_vmem [thread:$0]  %s247_s1, 256, %s212_s12, [#allocation5], %s192_s0, %s192_s0, %s193_s3  }
  0x22   :  { %186 = dma.done.wait [#allocation3], 128  }
  0x23   :  { %187 = vsyncadd [#allocation3], 4294967168 }
  0x24   :  { %188 = dma.done.wait [#allocation5], 256  }
  0x25   :  { %189 = vsyncadd [#allocation5], 4294967040  ;;  %v194_v0 = vmov 0.0|0.0   ;;  %vm195_vm0 = vmmov 0   ;;  %v196_v1 = vmov 0.0   ;;  %v38_v2 = vld [vmem:[#allocation4] sm:$0xff] }
  0x26   :  { %132 = vmatprep.subr.bf16.mxu0 %v194_v0  ;;  %129 = vmatprep.mubr.msk.f32.mxu0 %vm195_vm0, %v196_v1  ;;  %v39_v3 = vld [vmem:[#allocation4 + $0x8] sm:$0xff]  ;;  %v37_v5 = vld [vmem:[#allocation2] sm:$0xff]  ;;  %vm40_vm1 = vcmask 130048  }
  0x27   :  { %v133_v4 = vpack.c.bf16 %v39_v3, %v38_v2 }
  0x29   :  { %134 = vmatpush3.bf16.msra.mxu0 %v133_v4 }
  0x2c   :  { %130 = vmatmul.mubr.msk.f32.vlgmr.msra.gmra.mrb[0].mxu0 %vm40_vm1, %v37_v5 }
  0xff   :  { %v110_v6 = vpop.f32.mrb[0].mxu0 }
 0x100   :  { %114 = vst [vmem:[%s248_s2] sm:$0xff] %v110_v6  ;;  %v131_v7 = vpop.f32.mrb[1].mxu0 }
 0x101   :  { %119 = vsyncpa [#allocation3], 1 }
 0x102   :  { %120 = vsyncpa [#allocation5], 1 }

</bundles_post_ra>
